<compile_context>
chip_gen: v5e
topology: v5e:2x2
jax: 0.10.0
libtpu: 0.0.40
codegen_flags: <defaults>
</compile_context>

<pallas_src>
import functools

import jax
import jax.numpy as jnp
from jax.experimental import pallas as pl
from jax.experimental.pallas import tpu as pltpu


def _round_up(x, m):
    return (x + m - 1) // m * m


def _pick_batch_tile(b_pad, max_batch_tile):
    """Largest 128-multiple tile that divides b_pad, fits max_batch_tile, and leaves
    >=2 grid tiles when possible (keeps both v7x TensorCores / megacore busy)."""
    units = b_pad // 128
    max_units = max(1, max_batch_tile // 128)
    min_tiles = 2 if units >= 2 else 1
    best = 1
    for d in range(1, units + 1):
        if units % d == 0 and d <= max_units and units // d >= min_tiles:
            best = d
    return 128 * best


def _n2h_kernel(w1_ref, x_ref, b1_ref, w2_ref, b2_ref, o_ref, *, bound, module_size, afunc):
    # x tile arrives straight from HBM as (TB, dim_in) f32; cast on the VPU so the wrapper
    # never materializes a transposed / bf16 copy of x in HBM.
    xb = x_ref[...].astype(jnp.bfloat16)

    # First layer on the MXU in 'nt' form: contract dim_in of both operands so the x tile
    # is consumed as the transposed RHS natively (no XLU transpose inserted).
    # bf16 operands, f32 accumulation.  Result: (M*dim_out, TB), batch on lanes.
    h = jax.lax.dot_general(
        w1_ref[...], xb,
        dimension_numbers=(((1,), (1,)), ((), ())),
        preferred_element_type=jnp.float32)

    h = afunc(h + b1_ref[...])                       # bias + activation in f32 (v5e-safe)

    # Second layer on the VPU: per-output-neuron combine over the M module units.
    # Rows are m-major (row = m*dim_out + o), so each term is a contiguous sublane slice.
    # Fused mul+add per slice — no (M*dim_out, TB) temp held live next to h.
    dim_out = h.shape[0] // module_size
    w2 = w2_ref[...]                                  # (M*dim_out, 1) column, lane-broadcast
    y = h[:dim_out, :] * w2[:dim_out, :]
    for m in range(1, module_size):                   # small static int -> unrolled
        lo = m * dim_out
        y = y + h[lo:lo + dim_out, :] * w2[lo:lo + dim_out, :]

    y = y + b2_ref[...]
    y = jnp.clip(y, -bound, bound)                    # F.hardtanh
    o_ref[...] = y.astype(o_ref.dtype)                # (dim_out, TB): lane-dense store


def pack_n2h_params(weight1, bias1, weight2, bias2):
    """One-time parameter re-layout (call once at init, NOT per forward).

    Row layout is m-major: row r = m*dim_out + o.
      weight1 (dim_out, dim_in, M) -> W1^T (M*dim_out, dim_in) bf16
      bias1   (dim_out, 1, M)      -> (M*dim_out, 1) f32
      weight2 (dim_out, M, 1)      -> (M*dim_out, 1) f32
      bias2   (dim_out, 1, 1)      -> (dim_out, 1)   f32
    """
    dim_out, dim_in, M = weight1.shape
    w1T = jnp.transpose(weight1, (2, 0, 1)).reshape(M * dim_out, dim_in).astype(jnp.bfloat16)
    b1_col = jnp.transpose(bias1, (2, 1, 0)).reshape(M * dim_out, 1).astype(jnp.float32)
    w2_col = jnp.transpose(weight2, (1, 0, 2)).reshape(M * dim_out, 1).astype(jnp.float32)
    b2_col = bias2.reshape(dim_out, 1).astype(jnp.float32)
    return w1T, b1_col, w2_col, b2_col


def n2h_forward(x, packed_params, bound, afunc=jnp.tanh, max_batch_tile=512):
    """x: (B, C, H, W) f32.  packed_params: output of pack_n2h_params().
    Returns (B, dim_out) f32 — same semantics as N2h.forward.
    NOTE: `bound` is baked in at trace time (static hyperparameter)."""
    w1T, b1_col, w2_col, b2_col = packed_params
    R, dim_in = w1T.shape                      # R = M * dim_out
    dim_out = b2_col.shape[0]
    M = R // dim_out
    B = x.shape[0]

    # ---- glue (plain JAX): NCHW flatten + minimal batch padding only.  No transpose or
    # bf16 materialization of x in HBM — the kernel reads x2d tiles directly. ----
    x2d = x.reshape(B, -1).astype(jnp.float32)
    b_pad = _round_up(B, 128)                  # padding waste bounded by < 128 rows
    if b_pad != B:
        x2d = jnp.pad(x2d, ((0, b_pad - B), (0, 0)))
    tb = _pick_batch_tile(b_pad, max_batch_tile)

    # VMEM budget (bytes): double-buffered x tile + single-buffered resident weights
    # + output tiles + (R, tb) f32 intermediates.  Used to set the scoped VMEM limit
    # explicitly (v5e default is only 16 MiB; v6e/v7x default 32 MiB).
    est = (2 * tb * dim_in * 4                 # x tiles (f32, double-buffered)
           + R * dim_in * 2                    # W1^T resident (bf16)
           + 2 * max(dim_out, 8) * tb * 4      # output tiles
           + 3 * R * tb * 4                    # h / y temporaries
           + 3 * _round_up(R, 8) * 128 * 4)    # small resident columns (lane-padded)
    vmem_limit = int(min(max(2 * est, 32 * 1024 * 1024), 100 * 1024 * 1024))

    kernel = functools.partial(_n2h_kernel, bound=float(bound), module_size=M, afunc=afunc)

    def _run(resident_kwargs):
        return pl.pallas_call(
            kernel,
            out_shape=jax.ShapeDtypeStruct((dim_out, b_pad), jnp.float32),
            grid=(b_pad // tb,),
            in_specs=[
                pl.BlockSpec((R, dim_in), lambda i: (0, 0), **resident_kwargs),   # W1^T resident
                pl.BlockSpec((tb, dim_in), lambda i: (i, 0)),                     # x tiled over batch
                pl.BlockSpec((R, 1), lambda i: (0, 0), **resident_kwargs),        # b1 resident
                pl.BlockSpec((R, 1), lambda i: (0, 0), **resident_kwargs),        # W2 resident
                pl.BlockSpec((dim_out, 1), lambda i: (0, 0), **resident_kwargs),  # b2 resident
            ],
            out_specs=pl.BlockSpec((dim_out, tb), lambda i: (0, i)),
            compiler_params=pltpu.CompilerParams(
                dimension_semantics=("parallel",),   # independent batch tiles -> megacore / dual-TC
                vmem_limit_bytes=vmem_limit,
            ),
        )(w1T, x2d, b1_col, w2_col, b2_col)

    try:
        # Resident operands have constant index_maps: a single VMEM buffer is enough
        # (halves the fixed W1^T footprint — the point of this is v7x's 64 MiB VMEM).
        yT = _run({"pipeline_mode": pl.Buffered(1)})
    except Exception:
        # Version-compat fallback: default (double-buffered) resident specs.
        yT = _run({})

    # (dim_out, B) -> (B, dim_out): exactly the module's .permute(1, 0).  Tiny vs the
    # x stream; drop it if a downstream consumer accepts the pre-permute layout.
    return jnp.transpose(yT[:, :B])


def _reference(x, weight1, bias1, weight2, bias2, bound):
    # Pure-JAX (f32) mirror of the PyTorch forward, for correctness checking.
    x2d = x.reshape(x.shape[0], -1)
    h = jnp.tanh(jnp.einsum("bi,oim->obm", x2d, weight1) + bias1)      # (dim_out, B, M)
    y = jnp.einsum("obm,oml->obl", h, weight2) + bias2                 # (dim_out, B, 1)
    y = jnp.clip(y, -bound, bound)
    return jnp.transpose(y[:, :, 0], (1, 0))                           # (B, dim_out)


if __name__ == "__main__":
    # Module config (small, consistent with N2h): shape_in = (4, 8, 8) -> dim_in = 256.
    B, C, H, W = 2, 4, 8, 8
    dim_in = C * H * W
    dim_out = 16
    module_size = 4
    bound = 1.0

    key = jax.random.PRNGKey(0)
    kx, k1, k2, k3, k4 = jax.random.split(key, 5)

    std = 1.0 / dim_in ** 0.5
    x = jax.random.normal(kx, (B, C, H, W), dtype=jnp.float32)
    weight1 = jax.random.uniform(k1, (dim_out, dim_in, module_size), jnp.float32, -std, std)
    bias1 = jax.random.uniform(k2, (dim_out, 1, module_size), jnp.float32, -std, std)
    weight2 = jax.random.uniform(k3, (dim_out, module_size, 1), jnp.float32, -std, std)
    bias2 = jax.random.uniform(k4, (dim_out, 1, 1), jnp.float32, -std, std)

    packed = pack_n2h_params(weight1, bias1, weight2, bias2)   # one-time re-layout (init-time)
    out = jax.block_until_ready(n2h_forward(x, packed, bound))
    ref = _reference(x, weight1, bias1, weight2, bias2, bound)

    assert out.shape == (B, dim_out), out.shape
    # bf16 first-layer operands (f32 accumulation) -> loosened tolerance vs the f32 reference.
    assert jnp.allclose(out, ref, atol=1e-2, rtol=1e-2), float(jnp.max(jnp.abs(out - ref)))

    print("KERNEL_OK")
</pallas_src>

<mosaic_0001>
module attributes {stable_mosaic.version = 11 : i64} {
  func.func @_n2h_kernel(%arg0: i32, %arg1: memref<64x256xbf16, #tpu.memory_space<vmem>>, %arg2: memref<128x256xf32, #tpu.memory_space<vmem>>, %arg3: memref<64x1xf32, #tpu.memory_space<vmem>>, %arg4: memref<64x1xf32, #tpu.memory_space<vmem>>, %arg5: memref<16x1xf32, #tpu.memory_space<vmem>>, %arg6: memref<16x128xf32, #tpu.memory_space<vmem>>) attributes {dimension_semantics = [#tpu.dimension_semantics<parallel>], iteration_bounds = array<i64: 1>, scalar_prefetch = 0 : i64, scratch_operands = 0 : i64, tpu.core_type = #tpu.core_type<tc>, window_params = [{pipeline_mode = #tpu.pipeline_mode<synchronous>, transform_indices = @transform_0, window_bounds = array<i64: 64, 256>}, {transform_indices = @transform_1, window_bounds = array<i64: 128, 256>}, {pipeline_mode = #tpu.pipeline_mode<synchronous>, transform_indices = @transform_2, window_bounds = array<i64: 64, 1>}, {pipeline_mode = #tpu.pipeline_mode<synchronous>, transform_indices = @transform_3, window_bounds = array<i64: 64, 1>}, {pipeline_mode = #tpu.pipeline_mode<synchronous>, transform_indices = @transform_4, window_bounds = array<i64: 16, 1>}, {transform_indices = @transform_5, window_bounds = array<i64: 16, 128>}]} {
    %c0 = arith.constant 0 : index
    %c0_0 = arith.constant 0 : index
    %0 = vector.load %arg2[%c0, %c0_0] : memref<128x256xf32, #tpu.memory_space<vmem>>, vector<128x256xf32>
    %1 = arith.truncf %0 : vector<128x256xf32> to vector<128x256xbf16>
    %c0_1 = arith.constant 0 : index
    %c0_2 = arith.constant 0 : index
    %2 = vector.load %arg1[%c0_1, %c0_2] : memref<64x256xbf16, #tpu.memory_space<vmem>>, vector<64x256xbf16>
    %cst = arith.constant dense<0.000000e+00> : vector<64x128xf32>
    %3 = tpu.matmul %2, %1, %cst {dimension_numbers = #tpu.dot_dimension_numbers<[1], [1], [0], [0], [0, 0, 1, 0], [], []>} : vector<64x256xbf16>, vector<128x256xbf16>, vector<64x128xf32> -> vector<64x128xf32>
    %c0_3 = arith.constant 0 : index
    %c0_4 = arith.constant 0 : index
    %4 = vector.load %arg3[%c0_3, %c0_4] : memref<64x1xf32, #tpu.memory_space<vmem>>, vector<64x1xf32>
    %5 = vector.broadcast %4 : vector<64x1xf32> to vector<64x128xf32>
    %6 = arith.addf %3, %5 : vector<64x128xf32>
    %7 = math.tanh %6 : vector<64x128xf32>
    %c0_5 = arith.constant 0 : index
    %c0_6 = arith.constant 0 : index
    %8 = vector.load %arg4[%c0_5, %c0_6] : memref<64x1xf32, #tpu.memory_space<vmem>>, vector<64x1xf32>
    %9 = vector.extract_strided_slice %7 {offsets = [0, 0], sizes = [16, 128], strides = [1, 1]} : vector<64x128xf32> to vector<16x128xf32>
    %10 = vector.extract_strided_slice %8 {offsets = [0, 0], sizes = [16, 1], strides = [1, 1]} : vector<64x1xf32> to vector<16x1xf32>
    %11 = vector.broadcast %10 : vector<16x1xf32> to vector<16x128xf32>
    %12 = arith.mulf %9, %11 : vector<16x128xf32>
    %13 = vector.extract_strided_slice %7 {offsets = [16, 0], sizes = [16, 128], strides = [1, 1]} : vector<64x128xf32> to vector<16x128xf32>
    %14 = vector.extract_strided_slice %8 {offsets = [16, 0], sizes = [16, 1], strides = [1, 1]} : vector<64x1xf32> to vector<16x1xf32>
    %15 = vector.broadcast %14 : vector<16x1xf32> to vector<16x128xf32>
    %16 = arith.mulf %13, %15 : vector<16x128xf32>
    %17 = arith.addf %12, %16 : vector<16x128xf32>
    %18 = vector.extract_strided_slice %7 {offsets = [32, 0], sizes = [16, 128], strides = [1, 1]} : vector<64x128xf32> to vector<16x128xf32>
    %19 = vector.extract_strided_slice %8 {offsets = [32, 0], sizes = [16, 1], strides = [1, 1]} : vector<64x1xf32> to vector<16x1xf32>
    %20 = vector.broadcast %19 : vector<16x1xf32> to vector<16x128xf32>
    %21 = arith.mulf %18, %20 : vector<16x128xf32>
    %22 = arith.addf %17, %21 : vector<16x128xf32>
    %23 = vector.extract_strided_slice %7 {offsets = [48, 0], sizes = [16, 128], strides = [1, 1]} : vector<64x128xf32> to vector<16x128xf32>
    %24 = vector.extract_strided_slice %8 {offsets = [48, 0], sizes = [16, 1], strides = [1, 1]} : vector<64x1xf32> to vector<16x1xf32>
    %25 = vector.broadcast %24 : vector<16x1xf32> to vector<16x128xf32>
    %26 = arith.mulf %23, %25 : vector<16x128xf32>
    %27 = arith.addf %22, %26 : vector<16x128xf32>
    %c0_7 = arith.constant 0 : index
    %c0_8 = arith.constant 0 : index
    %28 = vector.load %arg5[%c0_7, %c0_8] : memref<16x1xf32, #tpu.memory_space<vmem>>, vector<16x1xf32>
    %29 = vector.broadcast %28 : vector<16x1xf32> to vector<16x128xf32>
    %30 = arith.addf %27, %29 : vector<16x128xf32>
    %cst_9 = arith.constant -1.000000e+00 : f32
    %cst_10 = arith.constant 1.000000e+00 : f32
    %31 = vector.broadcast %cst_9 : f32 to vector<16x128xf32>
    %32 = arith.maximumf %31, %30 : vector<16x128xf32>
    %33 = vector.broadcast %cst_10 : f32 to vector<16x128xf32>
    %34 = arith.minimumf %33, %32 : vector<16x128xf32>
    %c0_11 = arith.constant 0 : index
    %c0_12 = arith.constant 0 : index
    %35 = vector.load %arg6[%c0_11, %c0_12] : memref<16x128xf32, #tpu.memory_space<vmem>>, vector<16x128xf32>
    tpu.vector_store %arg6[%c0_11, %c0_12], %34 {strides = array<i32>} : memref<16x128xf32, #tpu.memory_space<vmem>>, vector<16x128xf32>,
    return
  }
  func.func @transform_0(%arg0: i32) -> (i32, i32) {
    %c0_i32 = arith.constant 0 : i32
    %c0_i32_0 = arith.constant 0 : i32
    %c0_i32_1 = arith.constant 0 : i32
    return %c0_i32, %c0_i32_0 : i32, i32
  }
  func.func @transform_1(%arg0: i32) -> (i32, i32) {
    %c0_i32 = arith.constant 0 : i32
    %c0_i32_0 = arith.constant 0 : i32
    return %arg0, %c0_i32 : i32, i32
  }
  func.func @transform_2(%arg0: i32) -> (i32, i32) {
    %c0_i32 = arith.constant 0 : i32
    %c0_i32_0 = arith.constant 0 : i32
    %c0_i32_1 = arith.constant 0 : i32
    return %c0_i32, %c0_i32_0 : i32, i32
  }
  func.func @transform_3(%arg0: i32) -> (i32, i32) {
    %c0_i32 = arith.constant 0 : i32
    %c0_i32_0 = arith.constant 0 : i32
    %c0_i32_1 = arith.constant 0 : i32
    return %c0_i32, %c0_i32_0 : i32, i32
  }
  func.func @transform_4(%arg0: i32) -> (i32, i32) {
    %c0_i32 = arith.constant 0 : i32
    %c0_i32_0 = arith.constant 0 : i32
    %c0_i32_1 = arith.constant 0 : i32
    return %c0_i32, %c0_i32_0 : i32, i32
  }
  func.func @transform_5(%arg0: i32) -> (i32, i32) {
    %c0_i32 = arith.constant 0 : i32
    %c0_i32_0 = arith.constant 0 : i32
    return %c0_i32, %arg0 : i32, i32
  }
}

module attributes {stable_mosaic.version = 11 : i64} {
  func.func @_n2h_kernel(%arg0: i32, %arg1: memref<64x256xbf16, #tpu.memory_space<vmem>>, %arg2: memref<128x256xf32, #tpu.memory_space<vmem>>, %arg3: memref<64x1xf32, #tpu.memory_space<vmem>>, %arg4: memref<64x1xf32, #tpu.memory_space<vmem>>, %arg5: memref<16x1xf32, #tpu.memory_space<vmem>>, %arg6: memref<16x128xf32, #tpu.memory_space<vmem>>) attributes {dimension_semantics = [#tpu.dimension_semantics<parallel>], iteration_bounds = array<i64: 1>, scalar_prefetch = 0 : i64, scratch_operands = 0 : i64, tpu.core_type = #tpu.core_type<tc>, window_params = [{pipeline_mode = #tpu.pipeline_mode<synchronous>, transform_indices = @transform_0, window_bounds = array<i64: 64, 256>}, {transform_indices = @transform_1, window_bounds = array<i64: 128, 256>}, {pipeline_mode = #tpu.pipeline_mode<synchronous>, transform_indices = @transform_2, window_bounds = array<i64: 64, 1>}, {pipeline_mode = #tpu.pipeline_mode<synchronous>, transform_indices = @transform_3, window_bounds = array<i64: 64, 1>}, {pipeline_mode = #tpu.pipeline_mode<synchronous>, transform_indices = @transform_4, window_bounds = array<i64: 16, 1>}, {transform_indices = @transform_5, window_bounds = array<i64: 16, 128>}]} {
    %c0 = arith.constant 0 : index
    %c0_0 = arith.constant 0 : index
    %0 = vector.load %arg2[%c0, %c0_0] : memref<128x256xf32, #tpu.memory_space<vmem>>, vector<128x256xf32>
    %1 = arith.truncf %0 : vector<128x256xf32> to vector<128x256xbf16>
    %c0_1 = arith.constant 0 : index
    %c0_2 = arith.constant 0 : index
    %2 = vector.load %arg1[%c0_1, %c0_2] : memref<64x256xbf16, #tpu.memory_space<vmem>>, vector<64x256xbf16>
    %cst = arith.constant dense<0.000000e+00> : vector<64x128xf32>
    %3 = tpu.matmul %2, %1, %cst {dimension_numbers = #tpu.dot_dimension_numbers<[1], [1], [0], [0], [0, 0, 1, 0], [], []>} : vector<64x256xbf16>, vector<128x256xbf16>, vector<64x128xf32> -> vector<64x128xf32>
    %c0_3 = arith.constant 0 : index
    %c0_4 = arith.constant 0 : index
    %4 = vector.load %arg3[%c0_3, %c0_4] : memref<64x1xf32, #tpu.memory_space<vmem>>, vector<64x1xf32>
    %5 = vector.broadcast %4 : vector<64x1xf32> to vector<64x128xf32>
    %6 = arith.addf %3, %5 : vector<64x128xf32>
    %7 = math.tanh %6 : vector<64x128xf32>
    %c0_5 = arith.constant 0 : index
    %c0_6 = arith.constant 0 : index
    %8 = vector.load %arg4[%c0_5, %c0_6] : memref<64x1xf32, #tpu.memory_space<vmem>>, vector<64x1xf32>
    %9 = vector.extract_strided_slice %7 {offsets = [0, 0], sizes = [16, 128], strides = [1, 1]} : vector<64x128xf32> to vector<16x128xf32>
    %10 = vector.extract_strided_slice %8 {offsets = [0, 0], sizes = [16, 1], strides = [1, 1]} : vector<64x1xf32> to vector<16x1xf32>
    %11 = vector.broadcast %10 : vector<16x1xf32> to vector<16x128xf32>
    %12 = arith.mulf %9, %11 : vector<16x128xf32>
    %13 = vector.extract_strided_slice %7 {offsets = [16, 0], sizes = [16, 128], strides = [1, 1]} : vector<64x128xf32> to vector<16x128xf32>
    %14 = vector.extract_strided_slice %8 {offsets = [16, 0], sizes = [16, 1], strides = [1, 1]} : vector<64x1xf32> to vector<16x1xf32>
    %15 = vector.broadcast %14 : vector<16x1xf32> to vector<16x128xf32>
    %16 = arith.mulf %13, %15 : vector<16x128xf32>
    %17 = arith.addf %12, %16 : vector<16x128xf32>
    %18 = vector.extract_strided_slice %7 {offsets = [32, 0], sizes = [16, 128], strides = [1, 1]} : vector<64x128xf32> to vector<16x128xf32>
    %19 = vector.extract_strided_slice %8 {offsets = [32, 0], sizes = [16, 1], strides = [1, 1]} : vector<64x1xf32> to vector<16x1xf32>
    %20 = vector.broadcast %19 : vector<16x1xf32> to vector<16x128xf32>
    %21 = arith.mulf %18, %20 : vector<16x128xf32>
    %22 = arith.addf %17, %21 : vector<16x128xf32>
    %23 = vector.extract_strided_slice %7 {offsets = [48, 0], sizes = [16, 128], strides = [1, 1]} : vector<64x128xf32> to vector<16x128xf32>
    %24 = vector.extract_strided_slice %8 {offsets = [48, 0], sizes = [16, 1], strides = [1, 1]} : vector<64x1xf32> to vector<16x1xf32>
    %25 = vector.broadcast %24 : vector<16x1xf32> to vector<16x128xf32>
    %26 = arith.mulf %23, %25 : vector<16x128xf32>
    %27 = arith.addf %22, %26 : vector<16x128xf32>
    %c0_7 = arith.constant 0 : index
    %c0_8 = arith.constant 0 : index
    %28 = vector.load %arg5[%c0_7, %c0_8] : memref<16x1xf32, #tpu.memory_space<vmem>>, vector<16x1xf32>
    %29 = vector.broadcast %28 : vector<16x1xf32> to vector<16x128xf32>
    %30 = arith.addf %27, %29 : vector<16x128xf32>
    %cst_9 = arith.constant -1.000000e+00 : f32
    %cst_10 = arith.constant 1.000000e+00 : f32
    %31 = vector.broadcast %cst_9 : f32 to vector<16x128xf32>
    %32 = arith.maximumf %31, %30 : vector<16x128xf32>
    %33 = vector.broadcast %cst_10 : f32 to vector<16x128xf32>
    %34 = arith.minimumf %33, %32 : vector<16x128xf32>
    %c0_11 = arith.constant 0 : index
    %c0_12 = arith.constant 0 : index
    %35 = vector.load %arg6[%c0_11, %c0_12] : memref<16x128xf32, #tpu.memory_space<vmem>>, vector<16x128xf32>
    tpu.vector_store %arg6[%c0_11, %c0_12], %34 {strides = array<i32>} : memref<16x128xf32, #tpu.memory_space<vmem>>, vector<16x128xf32>,
    return
  }
  func.func @transform_0(%arg0: i32) -> (i32, i32) {
    %c0_i32 = arith.constant 0 : i32
    %c0_i32_0 = arith.constant 0 : i32
    %c0_i32_1 = arith.constant 0 : i32
    return %c0_i32, %c0_i32_0 : i32, i32
  }
  func.func @transform_1(%arg0: i32) -> (i32, i32) {
    %c0_i32 = arith.constant 0 : i32
    %c0_i32_0 = arith.constant 0 : i32
    return %arg0, %c0_i32 : i32, i32
  }
  func.func @transform_2(%arg0: i32) -> (i32, i32) {
    %c0_i32 = arith.constant 0 : i32
    %c0_i32_0 = arith.constant 0 : i32
    %c0_i32_1 = arith.constant 0 : i32
    return %c0_i32, %c0_i32_0 : i32, i32
  }
  func.func @transform_3(%arg0: i32) -> (i32, i32) {
    %c0_i32 = arith.constant 0 : i32
    %c0_i32_0 = arith.constant 0 : i32
    %c0_i32_1 = arith.constant 0 : i32
    return %c0_i32, %c0_i32_0 : i32, i32
  }
  func.func @transform_4(%arg0: i32) -> (i32, i32) {
    %c0_i32 = arith.constant 0 : i32
    %c0_i32_0 = arith.constant 0 : i32
    %c0_i32_1 = arith.constant 0 : i32
    return %c0_i32, %c0_i32_0 : i32, i32
  }
  func.func @transform_5(%arg0: i32) -> (i32, i32) {
    %c0_i32 = arith.constant 0 : i32
    %c0_i32_0 = arith.constant 0 : i32
    return %c0_i32, %arg0 : i32, i32
  }
}

</mosaic_0001>

<bundles_post_ra>
// kernel: tpu_custom_call.1
= control target key start
LH: loop header
LB: loop body
LE: loop exit
PB: predicated region body
PF: predicated region fallthrough
CT: control target
= control target key end

     0   :  { %10 = vsyncpa [#allocation3], 0  ;;  %s629_s0 = inlined_call_operand.vmem [shape: bf16[64,256], index: 0, kind: input, shape index: {}]   ;;  %s630_s1 = inlined_call_operand.hbm [shape: f32[128,256], index: 1, kind: input, shape index: {}]   ;;  %s631_s2 = inlined_call_operand.vmem [shape: f32[64,1], index: 2, kind: input, shape index: {}]   ;;  %s632_s3 = inlined_call_operand.vmem [shape: f32[64,1], index: 3, kind: input, shape index: {}]   ;;  %s633_s4 = inlined_call_operand.vmem [shape: f32[16,1], index: 4, kind: input, shape index: {}]   ;;  %s634_s5 = inlined_call_operand.hbm [shape: f32[16,128], index: 5, kind: output, shape index: {}]  }
   0x1   :  { %11 = vsyncpa [#allocation4], 0  ;;  %s18_s20 = sshll.u32 %s630_s1, 4  ;;  %s484_s21 = smov [#allocation2]   ;;  %s19_s20 = int_to_ptr.hbm [resolvable:$true] %s18_s20 }
   0x2   :  { %s20_s22 = sshll.u32 %s484_s21, 4  ;;  %s485_s23 = smov 256   ;;  %s21_s22 = int_to_ptr.vmem [resolvable:$true] %s20_s22 }
   0x3   :  { %s486_s24 = smov 16  }
   0x4   :  { %26 = dma.hbm_to_vmem [thread:$0]  %s19_s20, 4096, %s21_s22, [#allocation3], %s485_s23, %s485_s23, %s486_s24  }
   0x5   :  { %480 = dma.done.wait [#allocation3], 4096  }
   0x6   :  { %481 = vsyncadd [#allocation3], 4294963200  ;;  %v65_v0 = vld [vmem:[#allocation2 + $0xe0] sm:$0xff]  ;;  %v67_v1 = vld [vmem:[#allocation2 + $0xf0] sm:$0xff]  ;;  %v487_v10 = vmov 0   ;;  %s335_s14 = sshll.u32 %s634_s5, 4  ;;  %s336_s14 = int_to_ptr.hbm [resolvable:$true] %s335_s14 }
   0x7   :  { %v66_v2 = vld [vmem:[#allocation2 + $0xe8] sm:$0xff]  ;;  %v83_v3 = vpack.c.bf16 %v67_v1, %v65_v0  ;;  %v68_v4 = vld [vmem:[#allocation2 + $0xf8] sm:$0xff]  ;;  %v61_v6 = vld [vmem:[#allocation2 + $0xc0] sm:$0xff]  ;;  %413 = vset.pattern.permute.xlu0 %v487_v10  ;;  %414 = vset.pattern.permute.xlu1 %v487_v10  ;;  %s489_s15 = smov 128   ;;  %s490_s16 = smov 8  }
   0x8   :  { %v84_v5 = vpack.c.bf16 %v68_v4, %v66_v2  ;;  %v63_v7 = vld [vmem:[#allocation2 + $0xd0] sm:$0xff]  ;;  %v62_v8 = vld [vmem:[#allocation2 + $0xc8] sm:$0xff]  ;;  %v64_v9 = vld [vmem:[#allocation2 + $0xd8] sm:$0xff]  ;;  %415 = vset.pattern.permute.xlu2 %v487_v10 }
   0x9   :  { %181 = vmatpush.bf16.xpose.msra.mxu0 %v83_v3  ;;  %390 = vmatpush.bf16.xpose.msra.mxu2 %v83_v3  ;;  %v93_v11 = vld [vmem:[%s631_s2] sm:$0xff]  ;;  %v81_v12 = vpack.c.bf16 %v63_v7, %v61_v6  ;;  %v95_v13 = vld [vmem:[%s631_s2 + $0x10] sm:$0xff]  ;;  %v82_v14 = vpack.c.bf16 %v64_v9, %v62_v8  ;;  %v94_v17 = vld [vmem:[%s631_s2 + $0x8] sm:$0xff] }
   0xa   :  { %210 = vmatpush.bf16.xpose.msra.mxu1 %v84_v5  ;;  %398 = vmatpush.bf16.xpose.msra.mxu3 %v84_v5  ;;  %v57_v15 = vld [vmem:[#allocation2 + $0xa0] sm:$0xff]  ;;  %v59_v16 = vld [vmem:[#allocation2 + $0xb0] sm:$0xff]  ;;  %v58_v18 = vld [vmem:[#allocation2 + $0xa8] sm:$0xff] }
   0xb   :  { %103 = vperm.xlu0 %413, %v93_v11   ;;  %113 = vperm.xlu1 %414, %v95_v13   ;;  %v60_v19 = vld [vmem:[#allocation2 + $0xb8] sm:$0xff]  ;;  %v79_v21 = vpack.c.bf16 %v59_v16, %v57_v15  ;;  %v53_v23 = vld [vmem:[#allocation2 + $0x80] sm:$0xff]  ;;  %v55_v24 = vld [vmem:[#allocation2 + $0x90] sm:$0xff] }
   0xc   :  { %v96_v20 = vld [vmem:[%s631_s2 + $0x18] sm:$0xff]  ;;  %v80_v22 = vpack.c.bf16 %v60_v19, %v58_v18  ;;  %v99_v25 = vld [vmem:[%s631_s2 + $0x30] sm:$0xff]  ;;  %v54_v26 = vld [vmem:[#allocation2 + $0x88] sm:$0xff]  ;;  %v77_v29 = vpack.c.bf16 %v55_v24, %v53_v23 }
   0xd   :  { %v56_v27 = vld [vmem:[#allocation2 + $0x98] sm:$0xff]  ;;  %v49_v31 = vld [vmem:[#allocation2 + $0x60] sm:$0xff]  ;;  %v51_v32 = vld [vmem:[#allocation2 + $0x70] sm:$0xff] }
   0xe   :  { %v100_v28 = vld [vmem:[%s631_s2 + $0x38] sm:$0xff]  ;;  %v78_v30 = vpack.c.bf16 %v56_v27, %v54_v26  ;;  %v248_v33 = vld [vmem:[%s632_s3 + $0x8] sm:$0xff]  ;;  %v97_v34 = vld [vmem:[%s631_s2 + $0x20] sm:$0xff]  ;;  %v75_v38 = vpack.c.bf16 %v51_v32, %v49_v31 }
   0xf   :  { %v50_v35 = vld [vmem:[#allocation2 + $0x68] sm:$0xff]  ;;  %v52_v36 = vld [vmem:[#allocation2 + $0x78] sm:$0xff]  ;;  %123 = vperm.xlu2 %415, %v97_v34   ;;  %v249_v37 = vld [vmem:[%s632_s3 + $0x10] sm:$0xff] }
  0x10   :  { %v76_v39 = vpack.c.bf16 %v52_v36, %v50_v35  ;;  %v98_v40 = vld [vmem:[%s631_s2 + $0x28] sm:$0xff]  ;;  %v45_v41 = vld [vmem:[#allocation2 + $0x40] sm:$0xff]  ;;  %v47_v42 = vld [vmem:[#allocation2 + $0x50] sm:$0xff] }
  0x11   :  { %182 = vmatpush.bf16.xpose.msra.mxu0 %v81_v12  ;;  %391 = vmatpush.bf16.xpose.msra.mxu2 %v81_v12  ;;  %v251_v43 = vld [vmem:[%s632_s3 + $0x20] sm:$0xff]  ;;  %v46_v44 = vld [vmem:[#allocation2 + $0x48] sm:$0xff]  ;;  %v48_v45 = vld [vmem:[#allocation2 + $0x58] sm:$0xff]  ;;  %v73_v47 = vpack.c.bf16 %v47_v42, %v45_v41 }
  0x12   :  { %211 = vmatpush.bf16.xpose.msra.mxu1 %v82_v14  ;;  %399 = vmatpush.bf16.xpose.msra.mxu3 %v82_v14  ;;  %v252_v46 = vld [vmem:[%s632_s3 + $0x28] sm:$0xff]  ;;  %v74_v48 = vpack.c.bf16 %v48_v45, %v46_v44  ;;  %v247_v49 = vld [vmem:[%s632_s3] sm:$0xff]  ;;  %v43_v51 = vld [vmem:[#allocation2 + $0x30] sm:$0xff] }
  0x13   :  { %108 = vperm.xlu0 %413, %v94_v17   ;;  %118 = vperm.xlu1 %414, %v96_v20   ;;  %v41_v50 = vld [vmem:[#allocation2 + $0x20] sm:$0xff]  ;;  %v254_v52 = vld [vmem:[%s632_s3 + $0x38] sm:$0xff]  ;;  %v42_v53 = vld [vmem:[#allocation2 + $0x28] sm:$0xff] }
  0x14   :  { %v44_v54 = vld [vmem:[#allocation2 + $0x38] sm:$0xff]  ;;  %v309_v55 = vld [vmem:[%s633_s4] sm:$0xff]  ;;  %v71_v56 = vpack.c.bf16 %v43_v51, %v41_v50  ;;  %v39_v60 = vld [vmem:[#allocation2 + $0x10] sm:$0xff] }
  0x15   :  { %v72_v57 = vpack.c.bf16 %v44_v54, %v42_v53  ;;  %v250_v58 = vld [vmem:[%s632_s3 + $0x18] sm:$0xff]  ;;  %v37_v59 = vld [vmem:[#allocation2] sm:$0xff]  ;;  %v38_v61 = vld [vmem:[#allocation2 + $0x8] sm:$0xff] }
  0x16   :  { %v40_v62 = vld [vmem:[#allocation2 + $0x18] sm:$0xff]  ;;  %v69_v63 = vpack.c.bf16 %v39_v60, %v37_v59  ;;  %v350_v1 = vld [vmem:[%s629_s0] sm:$0xf]  ;;  %v383_v2 = vld [vmem:[%s629_s0 + $0x4] sm:$0xf0] }
  0x17   :  { %128 = vperm.xlu2 %415, %v98_v40   ;;  %v70_v0 = vpack.c.bf16 %v40_v62, %v38_v61  ;;  %v253_v3 = vld [vmem:[%s632_s3 + $0x30] sm:$0xff]  ;;  %v366_v4 = vld [vmem:[%s629_s0 + $0x20] sm:$0xf]  ;;  %v387_v5 = vld [vmem:[%s629_s0 + $0x24] sm:$0xf0]  ;;  %v351_v10 = vor.u32 %v383_v2, %v350_v1 }
  0x18   :  { %v382_v6 = vld [vmem:[%s629_s0 + $0x4] sm:$0xf]  ;;  %v352_v7 = vld [vmem:[%s629_s0 + $0x8] sm:$0xf0]  ;;  %v367_v11 = vor.u32 %v387_v5, %v366_v4  ;;  %v358_v15 = vld [vmem:[%s629_s0 + $0x10] sm:$0xf] }
  0x19   :  { %183 = vmatpush.bf16.xpose.msra.mxu0 %v79_v21  ;;  %392 = vmatpush.bf16.xpose.msra.mxu2 %v79_v21  ;;  %v386_v8 = vld [vmem:[%s629_s0 + $0x24] sm:$0xf]  ;;  %v368_v9 = vld [vmem:[%s629_s0 + $0x28] sm:$0xf0]  ;;  %v355_v12 = vor.u32 %v382_v6, %v352_v7  ;;  %v385_v16 = vld [vmem:[%s629_s0 + $0x14] sm:$0xf0] }
  0x1a   :  { %212 = vmatpush.bf16.xpose.msra.mxu1 %v80_v22  ;;  %400 = vmatpush.bf16.xpose.msra.mxu3 %v80_v22  ;;  %v371_v13 = vor.u32 %v386_v8, %v368_v9  ;;  %v310_v14 = vld [vmem:[%s633_s4 + $0x8] sm:$0xff]  ;;  %v374_v17 = vld [vmem:[%s629_s0 + $0x30] sm:$0xf]  ;;  %v389_v18 = vld [vmem:[%s629_s0 + $0x34] sm:$0xf0]  ;;  %v359_v23 = vor.u32 %v385_v16, %v358_v15 }
  0x1b   :  { %133 = vperm.xlu0 %413, %v99_v25   ;;  %138 = vperm.xlu1 %414, %v100_v28   ;;  %v384_v19 = vld [vmem:[%s629_s0 + $0x14] sm:$0xf]  ;;  %v360_v20 = vld [vmem:[%s629_s0 + $0x18] sm:$0xf0]  ;;  %v375_v24 = vor.u32 %v389_v18, %v374_v17 }
  0x1c   :  { %v388_v21 = vld [vmem:[%s629_s0 + $0x34] sm:$0xf]  ;;  %v376_v22 = vld [vmem:[%s629_s0 + $0x38] sm:$0xf0]  ;;  %v363_v25 = vor.u32 %v384_v19, %v360_v20  ;;  %s488_s0 = smov [#allocation5]  }
  0x1d   :  { %v379_v26 = vor.u32 %v388_v21, %v376_v22  ;;  %s333_s11 = sshll.u32 %s488_s0, 4  ;;  %s334_s11 = int_to_ptr.vmem [resolvable:$true] %s333_s11 }
  0x1f   :  { %257 = vperm.xlu2 %415, %v247_v49  }
  0x21   :  { %184 = vmatpush.bf16.xpose.msra.mxu0 %v77_v29  ;;  %393 = vmatpush.bf16.xpose.msra.mxu2 %v77_v29 }
  0x22   :  { %213 = vmatpush.bf16.xpose.msra.mxu1 %v78_v30  ;;  %401 = vmatpush.bf16.xpose.msra.mxu3 %v78_v30 }
  0x23   :  { %262 = vperm.xlu0 %413, %v248_v33   ;;  %269 = vperm.xlu1 %414, %v249_v37  }
  0x27   :  { %274 = vperm.xlu2 %415, %v250_v58  }
  0x29   :  { %185 = vmatpush.bf16.xpose.msra.mxu0 %v75_v38  ;;  %394 = vmatpush.bf16.xpose.msra.mxu2 %v75_v38 }
  0x2a   :  { %214 = vmatpush.bf16.xpose.msra.mxu1 %v76_v39  ;;  %402 = vmatpush.bf16.xpose.msra.mxu3 %v76_v39 }
  0x2b   :  { %283 = vperm.xlu0 %413, %v251_v43   ;;  %288 = vperm.xlu1 %414, %v252_v46  }
  0x2f   :  { %297 = vperm.xlu2 %415, %v253_v3  }
  0x31   :  { %186 = vmatpush.bf16.xpose.msra.mxu0 %v73_v47  ;;  %395 = vmatpush.bf16.xpose.msra.mxu2 %v73_v47 }
  0x32   :  { %215 = vmatpush.bf16.xpose.msra.mxu1 %v74_v48  ;;  %403 = vmatpush.bf16.xpose.msra.mxu3 %v74_v48 }
  0x33   :  { %302 = vperm.xlu0 %413, %v254_v52   ;;  %313 = vperm.xlu1 %414, %v309_v55  }
  0x37   :  { %318 = vperm.xlu2 %415, %v310_v14  }
  0x39   :  { %187 = vmatpush.bf16.xpose.msra.mxu0 %v71_v56  ;;  %396 = vmatpush.bf16.xpose.msra.mxu2 %v71_v56 }
  0x3a   :  { %216 = vmatpush.bf16.xpose.msra.mxu1 %v72_v57  ;;  %404 = vmatpush.bf16.xpose.msra.mxu3 %v72_v57 }
  0x41   :  { %188 = vmatpush.bf16.xpose.msra.mxu0 %v69_v63  ;;  %397 = vmatpush.bf16.xpose.msra.mxu2 %v69_v63 }
  0x42   :  { %217 = vmatpush.bf16.xpose.msra.mxu1 %v70_v0  ;;  %405 = vmatpush.bf16.xpose.msra.mxu3 %v70_v0 }
  0x48   :  { %189 = vmatmul.bf16.vlgmr.msra.gmra.mxu0 %v351_v10  ;;  %199 = vmatmul.bf16.vlgmr.msra.gmra.mxu2 %v367_v11 }
  0x49   :  { %218 = vmatmul.bf16.vlgmr.msra.gmra.mxu1 %v355_v12  ;;  %228 = vmatmul.bf16.vlgmr.msra.gmra.mxu3 %v371_v13 }
  0x58   :  { %194 = vmatmul.bf16.gmra.mxu0 %v359_v23  ;;  %204 = vmatmul.bf16.gmra.mxu2 %v375_v24 }
  0x59   :  { %223 = vmatmul.bf16.gmra.mxu1 %v363_v25  ;;  %233 = vmatmul.bf16.gmra.mxu3 %v379_v26 }
  0x69   :  { %v124_v29 = vpop.permute.xlu2 %123 }
  0x71   :  { %v129_v34 = vpop.permute.xlu2 %128 }
  0x79   :  { %v258_v42 = vpop.permute.xlu2 %257 }
  0x7d   :  { %v114_v27 = vpop.permute.xlu1 %113  ;;  %v104_v28 = vpop.permute.xlu0 %103 }
  0x81   :  { %v275_v57 = vpop.permute.xlu2 %274 }
  0x85   :  { %v119_v30 = vpop.permute.xlu1 %118  ;;  %v109_v32 = vpop.permute.xlu0 %108 }
  0x89   :  { %v298_v17 = vpop.permute.xlu2 %297 }
  0x8d   :  { %v139_v36 = vpop.permute.xlu1 %138  ;;  %v134_v40 = vpop.permute.xlu0 %133 }
  0x95   :  { %v270_v48 = vpop.permute.xlu1 %269  ;;  %v263_v54 = vpop.permute.xlu0 %262 }
  0x9d   :  { %v289_v3 = vpop.permute.xlu1 %288  ;;  %v284_v11 = vpop.permute.xlu0 %283 }
  0xa5   :  { %v314_v26 = vpop.permute.xlu1 %313 }
  0xc5   :  { %v190_v31 = vpop.f32.mrf.mxu0 }
  0xc6   :  { %v219_v33 = vpop.f32.mrf.mxu1  ;;  %v191_v41 = vadd.f32 %v190_v31, %v104_v28 }
  0xc8   :  { %v220_v44 = vadd.f32 %v219_v33, %v191_v41 }
  0xca   :  { %416 = vtanh.f32 %v220_v44 }
  0xcb   :  { %v200_v35 = vpop.f32.mrf.mxu2 }
  0xcc   :  { %v229_v37 = vpop.f32.mrf.mxu3  ;;  %v201_v45 = vadd.f32 %v200_v35, %v124_v29 }
  0xcd   :  { %v192_v38 = vpop.f32.mrf.mxu0 }
  0xce   :  { %v221_v39 = vpop.f32.mrf.mxu1  ;;  %v193_v51 = vadd.f32 %v192_v38, %v109_v32  ;;  %v230_v52 = vadd.f32 %v229_v37, %v201_v45  ;;  %v303_v32 = vpop.permute.xlu0 %302 }
  0xd0   :  { %v222_v55 = vadd.f32 %v221_v39, %v193_v51  ;;  %v417_v62 = vpop.eup %416 }
  0xd1   :  { %v265_v6 = vmul.f32 %v417_v62, %v258_v42 }
  0xd3   :  { %v202_v43 = vpop.f32.mrf.mxu2 }
  0xd4   :  { %v231_v46 = vpop.f32.mrf.mxu3  ;;  %v203_v58 = vadd.f32 %v202_v43, %v129_v34 }
  0xd5   :  { %v195_v47 = vpop.f32.mrf.mxu0 }
  0xd6   :  { %v196_v49 = vadd.f32 %v195_v47, %v114_v27  ;;  %v224_v50 = vpop.f32.mrf.mxu1  ;;  %v232_v4 = vadd.f32 %v231_v46, %v203_v58 }
  0xd8   :  { %v225_v53 = vadd.f32 %v224_v50, %v196_v49 }
  0xda   :  { %418 = vtanh.f32 %v225_v53 }
  0xdb   :  { %v205_v56 = vpop.f32.mrf.mxu2  ;;  %420 = vtanh.f32 %v230_v52 }
  0xdc   :  { %v206_v59 = vadd.f32 %v205_v56, %v134_v40  ;;  %v234_v60 = vpop.f32.mrf.mxu3  ;;  %422 = vtanh.f32 %v222_v55 }
  0xdd   :  { %v197_v61 = vpop.f32.mrf.mxu0 }
  0xde   :  { %v235_v63 = vadd.f32 %v234_v60, %v206_v59  ;;  %v198_v0 = vadd.f32 %v197_v61, %v119_v30  ;;  %v226_v1 = vpop.f32.mrf.mxu1 }
  0xe0   :  { %v419_v2 = vpop.eup %418  ;;  %424 = vtanh.f32 %v235_v63  ;;  %v227_v5 = vadd.f32 %v226_v1, %v198_v0 }
  0xe1   :  { %v277_v7 = vmul.f32 %v419_v2, %v270_v48  ;;  %v421_v8 = vpop.eup %420 }
  0xe2   :  { %426 = vtanh.f32 %v227_v5  ;;  %v423_v13 = vpop.eup %422  ;;  %v291_v14 = vmul.f32 %v421_v8, %v284_v11 }
  0xe3   :  { %v279_v9 = vadd.f32 %v277_v7, %v265_v6  ;;  %v207_v10 = vpop.f32.mrf.mxu2  ;;  %428 = vtanh.f32 %v232_v4  ;;  %v266_v22 = vmul.f32 %v423_v13, %v263_v54 }
  0xe4   :  { %v208_v12 = vadd.f32 %v207_v10, %v139_v36  ;;  %v236_v15 = vpop.f32.mrf.mxu3  ;;  %v319_v36 = vpop.permute.xlu2 %318 }
  0xe5   :  { %v293_v19 = vadd.f32 %v291_v14, %v279_v9 }
  0xe6   :  { %v425_v16 = vpop.eup %424  ;;  %v237_v18 = vadd.f32 %v236_v15, %v208_v12 }
  0xe7   :  { %v305_v20 = vmul.f32 %v425_v16, %v298_v17 }
  0xe8   :  { %v427_v21 = vpop.eup %426  ;;  %430 = vtanh.f32 %v237_v18 }
  0xe9   :  { %v307_v23 = vadd.f32 %v305_v20, %v293_v19  ;;  %v278_v24 = vmul.f32 %v427_v21, %v275_v57  ;;  %v429_v25 = vpop.eup %428 }
  0xea   :  { %v292_v29 = vmul.f32 %v429_v25, %v289_v3 }
  0xeb   :  { %v321_v27 = vadd.f32 %v314_v26, %v307_v23  ;;  %v280_v28 = vadd.f32 %v278_v24, %v266_v22 }
  0xed   :  { %v380_v30 = vclamps-f32 %v321_v27, 1.0  ;;  %v294_v33 = vadd.f32 %v292_v29, %v280_v28 }
  0xee   :  { %v431_v31 = vpop.eup %430 }
  0xef   :  { %327 = vst [vmem:[#allocation5] sm:$0xff] %v380_v30  ;;  %v306_v34 = vmul.f32 %v431_v31, %v303_v32 }
  0xf1   :  { %v308_v35 = vadd.f32 %v306_v34, %v294_v33 }
  0xf3   :  { %v322_v37 = vadd.f32 %v319_v36, %v308_v35 }
  0xf5   :  { %v381_v38 = vclamps-f32 %v322_v37, 1.0 }
  0xf7   :  { %328 = vst [vmem:[#allocation5 + $0x8] sm:$0xff] %v381_v38 }
  0xf8   :  { %341 = dma.vmem_to_hbm [thread:$0]  %s334_s11, 256, %s336_s14, [#allocation4], %s489_s15, %s489_s15, %s490_s16  }
  0xf9   :  { %482 = dma.done.wait [#allocation4], 256  }
  0xfa   :  { %483 = vsyncadd [#allocation4], 4294967040 }
  0xfb   :  { %346 = vsyncpa [#allocation3], 1 }
  0xfc   :  { %347 = vsyncpa [#allocation4], 1 }

// kernel: tpu_custom_call.1
= control target key start
LH: loop header
LB: loop body
LE: loop exit
PB: predicated region body
PF: predicated region fallthrough
CT: control target
= control target key end

     0   :  { %10 = vsyncpa [#allocation3], 0  ;;  %s629_s0 = inlined_call_operand.vmem [shape: bf16[64,256], index: 0, kind: input, shape index: {}]   ;;  %s630_s1 = inlined_call_operand.hbm [shape: f32[128,256], index: 1, kind: input, shape index: {}]   ;;  %s631_s2 = inlined_call_operand.vmem [shape: f32[64,1], index: 2, kind: input, shape index: {}]   ;;  %s632_s3 = inlined_call_operand.vmem [shape: f32[64,1], index: 3, kind: input, shape index: {}]   ;;  %s633_s4 = inlined_call_operand.vmem [shape: f32[16,1], index: 4, kind: input, shape index: {}]   ;;  %s634_s5 = inlined_call_operand.hbm [shape: f32[16,128], index: 5, kind: output, shape index: {}]  }
   0x1   :  { %11 = vsyncpa [#allocation4], 0  ;;  %s18_s20 = sshll.u32 %s630_s1, 4  ;;  %s484_s21 = smov [#allocation2]   ;;  %s19_s20 = int_to_ptr.hbm [resolvable:$true] %s18_s20 }
   0x2   :  { %s20_s22 = sshll.u32 %s484_s21, 4  ;;  %s485_s23 = smov 256   ;;  %s21_s22 = int_to_ptr.vmem [resolvable:$true] %s20_s22 }
   0x3   :  { %s486_s24 = smov 16  }
   0x4   :  { %26 = dma.hbm_to_vmem [thread:$0]  %s19_s20, 4096, %s21_s22, [#allocation3], %s485_s23, %s485_s23, %s486_s24  }
   0x5   :  { %480 = dma.done.wait [#allocation3], 4096  }
   0x6   :  { %481 = vsyncadd [#allocation3], 4294963200  ;;  %v65_v0 = vld [vmem:[#allocation2 + $0xe0] sm:$0xff]  ;;  %v67_v1 = vld [vmem:[#allocation2 + $0xf0] sm:$0xff]  ;;  %v487_v10 = vmov 0   ;;  %s335_s14 = sshll.u32 %s634_s5, 4  ;;  %s336_s14 = int_to_ptr.hbm [resolvable:$true] %s335_s14 }
   0x7   :  { %v66_v2 = vld [vmem:[#allocation2 + $0xe8] sm:$0xff]  ;;  %v83_v3 = vpack.c.bf16 %v67_v1, %v65_v0  ;;  %v68_v4 = vld [vmem:[#allocation2 + $0xf8] sm:$0xff]  ;;  %v61_v6 = vld [vmem:[#allocation2 + $0xc0] sm:$0xff]  ;;  %413 = vset.pattern.permute.xlu0 %v487_v10  ;;  %414 = vset.pattern.permute.xlu1 %v487_v10  ;;  %s489_s15 = smov 128   ;;  %s490_s16 = smov 8  }
   0x8   :  { %v84_v5 = vpack.c.bf16 %v68_v4, %v66_v2  ;;  %v63_v7 = vld [vmem:[#allocation2 + $0xd0] sm:$0xff]  ;;  %v62_v8 = vld [vmem:[#allocation2 + $0xc8] sm:$0xff]  ;;  %v64_v9 = vld [vmem:[#allocation2 + $0xd8] sm:$0xff]  ;;  %415 = vset.pattern.permute.xlu2 %v487_v10 }
   0x9   :  { %181 = vmatpush.bf16.xpose.msra.mxu0 %v83_v3  ;;  %390 = vmatpush.bf16.xpose.msra.mxu2 %v83_v3  ;;  %v93_v11 = vld [vmem:[%s631_s2] sm:$0xff]  ;;  %v81_v12 = vpack.c.bf16 %v63_v7, %v61_v6  ;;  %v95_v13 = vld [vmem:[%s631_s2 + $0x10] sm:$0xff]  ;;  %v82_v14 = vpack.c.bf16 %v64_v9, %v62_v8  ;;  %v94_v17 = vld [vmem:[%s631_s2 + $0x8] sm:$0xff] }
   0xa   :  { %210 = vmatpush.bf16.xpose.msra.mxu1 %v84_v5  ;;  %398 = vmatpush.bf16.xpose.msra.mxu3 %v84_v5  ;;  %v57_v15 = vld [vmem:[#allocation2 + $0xa0] sm:$0xff]  ;;  %v59_v16 = vld [vmem:[#allocation2 + $0xb0] sm:$0xff]  ;;  %v58_v18 = vld [vmem:[#allocation2 + $0xa8] sm:$0xff] }
   0xb   :  { %103 = vperm.xlu0 %413, %v93_v11   ;;  %113 = vperm.xlu1 %414, %v95_v13   ;;  %v60_v19 = vld [vmem:[#allocation2 + $0xb8] sm:$0xff]  ;;  %v79_v21 = vpack.c.bf16 %v59_v16, %v57_v15  ;;  %v53_v23 = vld [vmem:[#allocation2 + $0x80] sm:$0xff]  ;;  %v55_v24 = vld [vmem:[#allocation2 + $0x90] sm:$0xff] }
   0xc   :  { %v96_v20 = vld [vmem:[%s631_s2 + $0x18] sm:$0xff]  ;;  %v80_v22 = vpack.c.bf16 %v60_v19, %v58_v18  ;;  %v99_v25 = vld [vmem:[%s631_s2 + $0x30] sm:$0xff]  ;;  %v54_v26 = vld [vmem:[#allocation2 + $0x88] sm:$0xff]  ;;  %v77_v29 = vpack.c.bf16 %v55_v24, %v53_v23 }
   0xd   :  { %v56_v27 = vld [vmem:[#allocation2 + $0x98] sm:$0xff]  ;;  %v49_v31 = vld [vmem:[#allocation2 + $0x60] sm:$0xff]  ;;  %v51_v32 = vld [vmem:[#allocation2 + $0x70] sm:$0xff] }
   0xe   :  { %v100_v28 = vld [vmem:[%s631_s2 + $0x38] sm:$0xff]  ;;  %v78_v30 = vpack.c.bf16 %v56_v27, %v54_v26  ;;  %v248_v33 = vld [vmem:[%s632_s3 + $0x8] sm:$0xff]  ;;  %v97_v34 = vld [vmem:[%s631_s2 + $0x20] sm:$0xff]  ;;  %v75_v38 = vpack.c.bf16 %v51_v32, %v49_v31 }
   0xf   :  { %v50_v35 = vld [vmem:[#allocation2 + $0x68] sm:$0xff]  ;;  %v52_v36 = vld [vmem:[#allocation2 + $0x78] sm:$0xff]  ;;  %123 = vperm.xlu2 %415, %v97_v34   ;;  %v249_v37 = vld [vmem:[%s632_s3 + $0x10] sm:$0xff] }
  0x10   :  { %v76_v39 = vpack.c.bf16 %v52_v36, %v50_v35  ;;  %v98_v40 = vld [vmem:[%s631_s2 + $0x28] sm:$0xff]  ;;  %v45_v41 = vld [vmem:[#allocation2 + $0x40] sm:$0xff]  ;;  %v47_v42 = vld [vmem:[#allocation2 + $0x50] sm:$0xff] }
  0x11   :  { %182 = vmatpush.bf16.xpose.msra.mxu0 %v81_v12  ;;  %391 = vmatpush.bf16.xpose.msra.mxu2 %v81_v12  ;;  %v251_v43 = vld [vmem:[%s632_s3 + $0x20] sm:$0xff]  ;;  %v46_v44 = vld [vmem:[#allocation2 + $0x48] sm:$0xff]  ;;  %v48_v45 = vld [vmem:[#allocation2 + $0x58] sm:$0xff]  ;;  %v73_v47 = vpack.c.bf16 %v47_v42, %v45_v41 }
  0x12   :  { %211 = vmatpush.bf16.xpose.msra.mxu1 %v82_v14  ;;  %399 = vmatpush.bf16.xpose.msra.mxu3 %v82_v14  ;;  %v252_v46 = vld [vmem:[%s632_s3 + $0x28] sm:$0xff]  ;;  %v74_v48 = vpack.c.bf16 %v48_v45, %v46_v44  ;;  %v247_v49 = vld [vmem:[%s632_s3] sm:$0xff]  ;;  %v43_v51 = vld [vmem:[#allocation2 + $0x30] sm:$0xff] }
  0x13   :  { %108 = vperm.xlu0 %413, %v94_v17   ;;  %118 = vperm.xlu1 %414, %v96_v20   ;;  %v41_v50 = vld [vmem:[#allocation2 + $0x20] sm:$0xff]  ;;  %v254_v52 = vld [vmem:[%s632_s3 + $0x38] sm:$0xff]  ;;  %v42_v53 = vld [vmem:[#allocation2 + $0x28] sm:$0xff] }
  0x14   :  { %v44_v54 = vld [vmem:[#allocation2 + $0x38] sm:$0xff]  ;;  %v309_v55 = vld [vmem:[%s633_s4] sm:$0xff]  ;;  %v71_v56 = vpack.c.bf16 %v43_v51, %v41_v50  ;;  %v39_v60 = vld [vmem:[#allocation2 + $0x10] sm:$0xff] }
  0x15   :  { %v72_v57 = vpack.c.bf16 %v44_v54, %v42_v53  ;;  %v250_v58 = vld [vmem:[%s632_s3 + $0x18] sm:$0xff]  ;;  %v37_v59 = vld [vmem:[#allocation2] sm:$0xff]  ;;  %v38_v61 = vld [vmem:[#allocation2 + $0x8] sm:$0xff] }
  0x16   :  { %v40_v62 = vld [vmem:[#allocation2 + $0x18] sm:$0xff]  ;;  %v69_v63 = vpack.c.bf16 %v39_v60, %v37_v59  ;;  %v350_v1 = vld [vmem:[%s629_s0] sm:$0xf]  ;;  %v383_v2 = vld [vmem:[%s629_s0 + $0x4] sm:$0xf0] }
  0x17   :  { %128 = vperm.xlu2 %415, %v98_v40   ;;  %v70_v0 = vpack.c.bf16 %v40_v62, %v38_v61  ;;  %v253_v3 = vld [vmem:[%s632_s3 + $0x30] sm:$0xff]  ;;  %v366_v4 = vld [vmem:[%s629_s0 + $0x20] sm:$0xf]  ;;  %v387_v5 = vld [vmem:[%s629_s0 + $0x24] sm:$0xf0]  ;;  %v351_v10 = vor.u32 %v383_v2, %v350_v1 }
  0x18   :  { %v382_v6 = vld [vmem:[%s629_s0 + $0x4] sm:$0xf]  ;;  %v352_v7 = vld [vmem:[%s629_s0 + $0x8] sm:$0xf0]  ;;  %v367_v11 = vor.u32 %v387_v5, %v366_v4  ;;  %v358_v15 = vld [vmem:[%s629_s0 + $0x10] sm:$0xf] }
  0x19   :  { %183 = vmatpush.bf16.xpose.msra.mxu0 %v79_v21  ;;  %392 = vmatpush.bf16.xpose.msra.mxu2 %v79_v21  ;;  %v386_v8 = vld [vmem:[%s629_s0 + $0x24] sm:$0xf]  ;;  %v368_v9 = vld [vmem:[%s629_s0 + $0x28] sm:$0xf0]  ;;  %v355_v12 = vor.u32 %v382_v6, %v352_v7  ;;  %v385_v16 = vld [vmem:[%s629_s0 + $0x14] sm:$0xf0] }
  0x1a   :  { %212 = vmatpush.bf16.xpose.msra.mxu1 %v80_v22  ;;  %400 = vmatpush.bf16.xpose.msra.mxu3 %v80_v22  ;;  %v371_v13 = vor.u32 %v386_v8, %v368_v9  ;;  %v310_v14 = vld [vmem:[%s633_s4 + $0x8] sm:$0xff]  ;;  %v374_v17 = vld [vmem:[%s629_s0 + $0x30] sm:$0xf]  ;;  %v389_v18 = vld [vmem:[%s629_s0 + $0x34] sm:$0xf0]  ;;  %v359_v23 = vor.u32 %v385_v16, %v358_v15 }
  0x1b   :  { %133 = vperm.xlu0 %413, %v99_v25   ;;  %138 = vperm.xlu1 %414, %v100_v28   ;;  %v384_v19 = vld [vmem:[%s629_s0 + $0x14] sm:$0xf]  ;;  %v360_v20 = vld [vmem:[%s629_s0 + $0x18] sm:$0xf0]  ;;  %v375_v24 = vor.u32 %v389_v18, %v374_v17 }
  0x1c   :  { %v388_v21 = vld [vmem:[%s629_s0 + $0x34] sm:$0xf]  ;;  %v376_v22 = vld [vmem:[%s629_s0 + $0x38] sm:$0xf0]  ;;  %v363_v25 = vor.u32 %v384_v19, %v360_v20  ;;  %s488_s0 = smov [#allocation5]  }
  0x1d   :  { %v379_v26 = vor.u32 %v388_v21, %v376_v22  ;;  %s333_s11 = sshll.u32 %s488_s0, 4  ;;  %s334_s11 = int_to_ptr.vmem [resolvable:$true] %s333_s11 }
  0x1f   :  { %257 = vperm.xlu2 %415, %v247_v49  }
  0x21   :  { %184 = vmatpush.bf16.xpose.msra.mxu0 %v77_v29  ;;  %393 = vmatpush.bf16.xpose.msra.mxu2 %v77_v29 }
  0x22   :  { %213 = vmatpush.bf16.xpose.msra.mxu1 %v78_v30  ;;  %401 = vmatpush.bf16.xpose.msra.mxu3 %v78_v30 }
  0x23   :  { %262 = vperm.xlu0 %413, %v248_v33   ;;  %269 = vperm.xlu1 %414, %v249_v37  }
  0x27   :  { %274 = vperm.xlu2 %415, %v250_v58  }
  0x29   :  { %185 = vmatpush.bf16.xpose.msra.mxu0 %v75_v38  ;;  %394 = vmatpush.bf16.xpose.msra.mxu2 %v75_v38 }
  0x2a   :  { %214 = vmatpush.bf16.xpose.msra.mxu1 %v76_v39  ;;  %402 = vmatpush.bf16.xpose.msra.mxu3 %v76_v39 }
  0x2b   :  { %283 = vperm.xlu0 %413, %v251_v43   ;;  %288 = vperm.xlu1 %414, %v252_v46  }
  0x2f   :  { %297 = vperm.xlu2 %415, %v253_v3  }
  0x31   :  { %186 = vmatpush.bf16.xpose.msra.mxu0 %v73_v47  ;;  %395 = vmatpush.bf16.xpose.msra.mxu2 %v73_v47 }
  0x32   :  { %215 = vmatpush.bf16.xpose.msra.mxu1 %v74_v48  ;;  %403 = vmatpush.bf16.xpose.msra.mxu3 %v74_v48 }
  0x33   :  { %302 = vperm.xlu0 %413, %v254_v52   ;;  %313 = vperm.xlu1 %414, %v309_v55  }
  0x37   :  { %318 = vperm.xlu2 %415, %v310_v14  }
  0x39   :  { %187 = vmatpush.bf16.xpose.msra.mxu0 %v71_v56  ;;  %396 = vmatpush.bf16.xpose.msra.mxu2 %v71_v56 }
  0x3a   :  { %216 = vmatpush.bf16.xpose.msra.mxu1 %v72_v57  ;;  %404 = vmatpush.bf16.xpose.msra.mxu3 %v72_v57 }
  0x41   :  { %188 = vmatpush.bf16.xpose.msra.mxu0 %v69_v63  ;;  %397 = vmatpush.bf16.xpose.msra.mxu2 %v69_v63 }
  0x42   :  { %217 = vmatpush.bf16.xpose.msra.mxu1 %v70_v0  ;;  %405 = vmatpush.bf16.xpose.msra.mxu3 %v70_v0 }
  0x48   :  { %189 = vmatmul.bf16.vlgmr.msra.gmra.mxu0 %v351_v10  ;;  %199 = vmatmul.bf16.vlgmr.msra.gmra.mxu2 %v367_v11 }
  0x49   :  { %218 = vmatmul.bf16.vlgmr.msra.gmra.mxu1 %v355_v12  ;;  %228 = vmatmul.bf16.vlgmr.msra.gmra.mxu3 %v371_v13 }
  0x58   :  { %194 = vmatmul.bf16.gmra.mxu0 %v359_v23  ;;  %204 = vmatmul.bf16.gmra.mxu2 %v375_v24 }
  0x59   :  { %223 = vmatmul.bf16.gmra.mxu1 %v363_v25  ;;  %233 = vmatmul.bf16.gmra.mxu3 %v379_v26 }
  0x69   :  { %v124_v29 = vpop.permute.xlu2 %123 }
  0x71   :  { %v129_v34 = vpop.permute.xlu2 %128 }
  0x79   :  { %v258_v42 = vpop.permute.xlu2 %257 }
  0x7d   :  { %v114_v27 = vpop.permute.xlu1 %113  ;;  %v104_v28 = vpop.permute.xlu0 %103 }
  0x81   :  { %v275_v57 = vpop.permute.xlu2 %274 }
  0x85   :  { %v119_v30 = vpop.permute.xlu1 %118  ;;  %v109_v32 = vpop.permute.xlu0 %108 }
  0x89   :  { %v298_v17 = vpop.permute.xlu2 %297 }
  0x8d   :  { %v139_v36 = vpop.permute.xlu1 %138  ;;  %v134_v40 = vpop.permute.xlu0 %133 }
  0x95   :  { %v270_v48 = vpop.permute.xlu1 %269  ;;  %v263_v54 = vpop.permute.xlu0 %262 }
  0x9d   :  { %v289_v3 = vpop.permute.xlu1 %288  ;;  %v284_v11 = vpop.permute.xlu0 %283 }
  0xa5   :  { %v314_v26 = vpop.permute.xlu1 %313 }
  0xc5   :  { %v190_v31 = vpop.f32.mrf.mxu0 }
  0xc6   :  { %v219_v33 = vpop.f32.mrf.mxu1  ;;  %v191_v41 = vadd.f32 %v190_v31, %v104_v28 }
  0xc8   :  { %v220_v44 = vadd.f32 %v219_v33, %v191_v41 }
  0xca   :  { %416 = vtanh.f32 %v220_v44 }
  0xcb   :  { %v200_v35 = vpop.f32.mrf.mxu2 }
  0xcc   :  { %v229_v37 = vpop.f32.mrf.mxu3  ;;  %v201_v45 = vadd.f32 %v200_v35, %v124_v29 }
  0xcd   :  { %v192_v38 = vpop.f32.mrf.mxu0 }
  0xce   :  { %v221_v39 = vpop.f32.mrf.mxu1  ;;  %v193_v51 = vadd.f32 %v192_v38, %v109_v32  ;;  %v230_v52 = vadd.f32 %v229_v37, %v201_v45  ;;  %v303_v32 = vpop.permute.xlu0 %302 }
  0xd0   :  { %v222_v55 = vadd.f32 %v221_v39, %v193_v51  ;;  %v417_v62 = vpop.eup %416 }
  0xd1   :  { %v265_v6 = vmul.f32 %v417_v62, %v258_v42 }
  0xd3   :  { %v202_v43 = vpop.f32.mrf.mxu2 }
  0xd4   :  { %v231_v46 = vpop.f32.mrf.mxu3  ;;  %v203_v58 = vadd.f32 %v202_v43, %v129_v34 }
  0xd5   :  { %v195_v47 = vpop.f32.mrf.mxu0 }
  0xd6   :  { %v196_v49 = vadd.f32 %v195_v47, %v114_v27  ;;  %v224_v50 = vpop.f32.mrf.mxu1  ;;  %v232_v4 = vadd.f32 %v231_v46, %v203_v58 }
  0xd8   :  { %v225_v53 = vadd.f32 %v224_v50, %v196_v49 }
  0xda   :  { %418 = vtanh.f32 %v225_v53 }
  0xdb   :  { %v205_v56 = vpop.f32.mrf.mxu2  ;;  %420 = vtanh.f32 %v230_v52 }
  0xdc   :  { %v206_v59 = vadd.f32 %v205_v56, %v134_v40  ;;  %v234_v60 = vpop.f32.mrf.mxu3  ;;  %422 = vtanh.f32 %v222_v55 }
  0xdd   :  { %v197_v61 = vpop.f32.mrf.mxu0 }
  0xde   :  { %v235_v63 = vadd.f32 %v234_v60, %v206_v59  ;;  %v198_v0 = vadd.f32 %v197_v61, %v119_v30  ;;  %v226_v1 = vpop.f32.mrf.mxu1 }
  0xe0   :  { %v419_v2 = vpop.eup %418  ;;  %424 = vtanh.f32 %v235_v63  ;;  %v227_v5 = vadd.f32 %v226_v1, %v198_v0 }
  0xe1   :  { %v277_v7 = vmul.f32 %v419_v2, %v270_v48  ;;  %v421_v8 = vpop.eup %420 }
  0xe2   :  { %426 = vtanh.f32 %v227_v5  ;;  %v423_v13 = vpop.eup %422  ;;  %v291_v14 = vmul.f32 %v421_v8, %v284_v11 }
  0xe3   :  { %v279_v9 = vadd.f32 %v277_v7, %v265_v6  ;;  %v207_v10 = vpop.f32.mrf.mxu2  ;;  %428 = vtanh.f32 %v232_v4  ;;  %v266_v22 = vmul.f32 %v423_v13, %v263_v54 }
  0xe4   :  { %v208_v12 = vadd.f32 %v207_v10, %v139_v36  ;;  %v236_v15 = vpop.f32.mrf.mxu3  ;;  %v319_v36 = vpop.permute.xlu2 %318 }
  0xe5   :  { %v293_v19 = vadd.f32 %v291_v14, %v279_v9 }
  0xe6   :  { %v425_v16 = vpop.eup %424  ;;  %v237_v18 = vadd.f32 %v236_v15, %v208_v12 }
  0xe7   :  { %v305_v20 = vmul.f32 %v425_v16, %v298_v17 }
  0xe8   :  { %v427_v21 = vpop.eup %426  ;;  %430 = vtanh.f32 %v237_v18 }
  0xe9   :  { %v307_v23 = vadd.f32 %v305_v20, %v293_v19  ;;  %v278_v24 = vmul.f32 %v427_v21, %v275_v57  ;;  %v429_v25 = vpop.eup %428 }
  0xea   :  { %v292_v29 = vmul.f32 %v429_v25, %v289_v3 }
  0xeb   :  { %v321_v27 = vadd.f32 %v314_v26, %v307_v23  ;;  %v280_v28 = vadd.f32 %v278_v24, %v266_v22 }
  0xed   :  { %v380_v30 = vclamps-f32 %v321_v27, 1.0  ;;  %v294_v33 = vadd.f32 %v292_v29, %v280_v28 }
  0xee   :  { %v431_v31 = vpop.eup %430 }
  0xef   :  { %327 = vst [vmem:[#allocation5] sm:$0xff] %v380_v30  ;;  %v306_v34 = vmul.f32 %v431_v31, %v303_v32 }
  0xf1   :  { %v308_v35 = vadd.f32 %v306_v34, %v294_v33 }
  0xf3   :  { %v322_v37 = vadd.f32 %v319_v36, %v308_v35 }
  0xf5   :  { %v381_v38 = vclamps-f32 %v322_v37, 1.0 }
  0xf7   :  { %328 = vst [vmem:[#allocation5 + $0x8] sm:$0xff] %v381_v38 }
  0xf8   :  { %341 = dma.vmem_to_hbm [thread:$0]  %s334_s11, 256, %s336_s14, [#allocation4], %s489_s15, %s489_s15, %s490_s16  }
  0xf9   :  { %482 = dma.done.wait [#allocation4], 256  }
  0xfa   :  { %483 = vsyncadd [#allocation4], 4294967040 }
  0xfb   :  { %346 = vsyncpa [#allocation3], 1 }
  0xfc   :  { %347 = vsyncpa [#allocation4], 1 }

</bundles_post_ra>
